<compile_context>
chip_gen: v5e
topology: v5e:2x2
jax: 0.10.0
libtpu: 0.0.40
codegen_flags: <defaults>
</compile_context>

<pallas_src>
import jax
import jax.numpy as jnp
import numpy as np
from jax.experimental import pallas as pl
from jax.experimental.pallas import tpu as pltpu


# ----------------------------------------------------------------------------
# Kernel 1: fused input projection for both directions (one MXU GEMM + bias).
# ----------------------------------------------------------------------------
def _matmul_bias_kernel(x_ref, w_ref, b_ref, o_ref):
    o_ref[...] = (jnp.dot(x_ref[...], w_ref[...],
                          preferred_element_type=jnp.float32) + b_ref[...])


def matmul_bias(x, w, b):
    # Small shapes -> whole problem resident in VMEM, single MXU GEMM.
    # TODO(synk): tile over rows (grid + BlockSpec) once T*B grows beyond VMEM.
    return pl.pallas_call(
        _matmul_bias_kernel,
        out_shape=jax.ShapeDtypeStruct((x.shape[0], w.shape[1]), jnp.float32),
        in_specs=[pl.BlockSpec(memory_space=pltpu.MemorySpace.VMEM)] * 3,
        out_specs=pl.BlockSpec(memory_space=pltpu.MemorySpace.VMEM),
    )(x, w, b)


# ----------------------------------------------------------------------------
# Kernel 2: bidirectional LSTM recurrence + fused classifier head.
#   gx_ref   : (T, B, 8H) precomputed x-gates, gate-major / direction-minor layout
#              [i_f i_b | f_f f_b | g_f g_b | o_f o_b], backward half already
#              time-reversed so step t reads one contiguous (B, 8H) slice.
#   whh_ref  : (2H, 8H) block-diagonal recurrent weights matching that layout.
#   q_ref    : (B, B_out, 2H) constant folding torch.reshape(h_n,[-1,2H]) @ w_mlp.
#   bmlp_ref : (1, 1) bias.
#   out_ref  : (B_out, 1) logits.
# ----------------------------------------------------------------------------
def _bilstm_fused_kernel(gx_ref, whh_ref, q_ref, bmlp_ref, out_ref):
    T, B, G = gx_ref.shape           # G = 8*H
    H2 = G // 4                      # 2*H : per-gate width ([fwd | bwd] halves)

    whh = whh_ref[...]               # hoisted out of the time loop
    # tanh-gate lane mask (g gate occupies lanes [2*H2, 3*H2)), hoisted.
    lane = jax.lax.broadcasted_iota(jnp.int32, (B, G), 1)
    is_g = (lane >= 2 * H2) & (lane < 3 * H2)

    def step(t, carry):
        h, c = carry                                              # (B, 2H) = [fwd | bwd]
        gates = gx_ref[t] + jnp.dot(h, whh,
                                    preferred_element_type=jnp.float32)   # (B, 8H)
        # Full-width EUP nonlinearities + one select instead of 4 narrow slices.
        act = jnp.where(is_g, jnp.tanh(gates), jax.nn.sigmoid(gates))
        i_g = act[:, 0 * H2:1 * H2]
        f_g = act[:, 1 * H2:2 * H2]
        g_g = act[:, 2 * H2:3 * H2]
        o_g = act[:, 3 * H2:4 * H2]
        c_new = f_g * c + i_g * g_g
        h_new = o_g * jnp.tanh(c_new)
        return h_new, c_new

    h0 = jnp.zeros((B, H2), jnp.float32)
    c0 = jnp.zeros((B, H2), jnp.float32)
    h_fin, _ = jax.lax.fori_loop(0, T, step, (h0, c0), unroll=True)

    # Fused Linear(2H, 1): logits[r] = sum_{b,c} h_fin[b, c] * Q[b, r, c] + bias.
    acc = q_ref[0] * h_fin[0:1, :]
    for b in range(1, q_ref.shape[0]):
        acc = acc + q_ref[b] * h_fin[b:b + 1, :]
    out_ref[...] = jnp.sum(acc, axis=1, keepdims=True) + bmlp_ref[...]


def bilstm_classifier_logits(gx, whh_block, q, b_mlp):
    b_out = q.shape[1]
    return pl.pallas_call(
        _bilstm_fused_kernel,
        out_shape=jax.ShapeDtypeStruct((b_out, 1), jnp.float32),
        in_specs=[pl.BlockSpec(memory_space=pltpu.MemorySpace.VMEM)] * 4,
        out_specs=pl.BlockSpec(memory_space=pltpu.MemorySpace.VMEM),
    )(gx, whh_block, q, b_mlp)


# ----------------------------------------------------------------------------
# Host-side weight rearrangements (one-time glue).
# ----------------------------------------------------------------------------
def build_whh_block(whh_f, whh_b):
    """Block-diagonal recurrent weights (2H, 8H) in gate-major / direction-minor
    column order, so that [h_f | h_b] @ W yields [i_f i_b f_f f_b g_f g_b o_f o_b]."""
    H = whh_f.shape[0]
    z = jnp.zeros((H, H), whh_f.dtype)
    cols = []
    for g in range(4):
        cols.append(jnp.concatenate([whh_f[:, g * H:(g + 1) * H], z], axis=0))
        cols.append(jnp.concatenate([z, whh_b[:, g * H:(g + 1) * H]], axis=0))
    return jnp.concatenate(cols, axis=1)


def build_q(w_mlp, B, H):
    """Fold `torch.reshape(h_n, [-1, 2H]) @ w_mlp` (which mixes batch elements, exactly
    like the PyTorch module) into a constant Q of shape (B, B_out, 2H) such that
    logits[r] = sum_{b,c} h_state[b, c] * Q[b, r, c]  (+ bias),
    where h_state is the kernel's (B, 2H) = [h_fwd | h_bwd] final hidden state."""
    B_out = (2 * B * H) // (2 * H)
    b_idx, d_idx, j_idx = np.meshgrid(np.arange(B), np.arange(2), np.arange(H),
                                      indexing="ij")
    flat = d_idx * (B * H) + b_idx * H + j_idx    # index in h_n.flatten()
    row = flat // (2 * H)                         # feat row after the reshape
    col = flat % (2 * H)                          # feat column after the reshape
    c_state = d_idx * H + j_idx                   # column in the kernel's h_state
    q = jnp.zeros((B, B_out, 2 * H), w_mlp.dtype)
    return q.at[b_idx, row, c_state].set(w_mlp[col, 0])


# ----------------------------------------------------------------------------
# Full forward pass (glue in plain JAX, compute in Pallas).
# ----------------------------------------------------------------------------
def lstm_classifier_forward(raw_input, params):
    # Embedding lookup (gather) — glue, done in plain JAX.
    emb = params["embedding"][raw_input]                       # (B, T, E)
    B, T, E = emb.shape
    H = params["whh_f"].shape[0]

    x_flat = jnp.transpose(emb, (1, 0, 2)).reshape(T * B, E)   # time-major, flattened

    # Hoisted input projection: one GEMM covering both directions, biases folded in.
    w_in = jnp.concatenate([params["wih_f"], params["wih_b"]], axis=1)   # (E, 8H)
    b_in = jnp.concatenate([params["b_f"], params["b_b"]], axis=1)       # (1, 8H)
    gx_all = matmul_bias(x_flat, w_in, b_in).reshape(T, B, 8 * H)

    # One-time rearrangement (outside the serial loop): time-reverse the backward
    # gates and reorder to gate-major / direction-minor [i_f i_b f_f f_b g_f g_b o_f o_b].
    gxf = gx_all[..., :4 * H]
    gxb = jnp.flip(gx_all[..., 4 * H:], axis=0)
    parts = []
    for g in range(4):
        parts.append(gxf[..., g * H:(g + 1) * H])
        parts.append(gxb[..., g * H:(g + 1) * H])
    gx = jnp.concatenate(parts, axis=-1)                       # (T, B, 8H)

    whh_block = build_whh_block(params["whh_f"], params["whh_b"])   # (2H, 8H)
    q = build_q(params["w_mlp"], B, H)                              # (B, B, 2H)

    # `h_n.permute(1, 0, 2)` in the PyTorch code is a no-op (result unused) — reproduced as no-op.
    # TODO(synk): Dropout(0.5) implemented as eval-mode identity (training-mode mask not modeled).
    return bilstm_classifier_logits(gx, whh_block, q, params["b_mlp"])


# ----------------------------------------------------------------------------
# Pure-JAX reference for correctness check.
# ----------------------------------------------------------------------------
def reference_forward(raw_input, params):
    emb = params["embedding"][raw_input]
    B, T, _ = emb.shape
    H = params["whh_f"].shape[0]

    def cell(x, h, c, wih, whh, b):
        gates = x @ wih + h @ whh + b
        i, f, g, o = jnp.split(gates, 4, axis=-1)
        i, f, o = jax.nn.sigmoid(i), jax.nn.sigmoid(f), jax.nn.sigmoid(o)
        g = jnp.tanh(g)
        c = f * c + i * g
        return o * jnp.tanh(c), c

    hf = jnp.zeros((B, H)); cf = jnp.zeros((B, H))
    hb = jnp.zeros((B, H)); cb = jnp.zeros((B, H))
    for t in range(T):
        hf, cf = cell(emb[:, t], hf, cf, params["wih_f"], params["whh_f"], params["b_f"])
        hb, cb = cell(emb[:, T - 1 - t], hb, cb, params["wih_b"], params["whh_b"], params["b_b"])
    h_n = jnp.stack([hf, hb], axis=0)
    feat = jnp.reshape(h_n, (-1, 2 * H))
    return feat @ params["w_mlp"] + params["b_mlp"]


# ----------------------------------------------------------------------------
# Deterministic parameter init (same shapes as the PyTorch module; weights are
# stored pre-transposed for the kernels: W_ih^T (E,4H), W_hh^T (H,4H), b = b_ih+b_hh).
# ----------------------------------------------------------------------------
def init_params(key, vocab_size, E, H):
    ks = jax.random.split(key, 11)
    k = 1.0 / np.sqrt(H)
    km = 1.0 / np.sqrt(2 * H)
    u = lambda kk, shape, bound: jax.random.uniform(kk, shape, jnp.float32, -bound, bound)
    return {
        "embedding": jax.random.normal(ks[0], (vocab_size, E), jnp.float32),
        "wih_f": u(ks[1], (E, 4 * H), k),
        "whh_f": u(ks[2], (H, 4 * H), k),
        "b_f":   u(ks[3], (1, 4 * H), k) + u(ks[4], (1, 4 * H), k),
        "wih_b": u(ks[5], (E, 4 * H), k),
        "whh_b": u(ks[6], (H, 4 * H), k),
        "b_b":   u(ks[7], (1, 4 * H), k) + u(ks[8], (1, 4 * H), k),
        "w_mlp": u(ks[9], (2 * H, 1), km),
        "b_mlp": u(ks[10], (1, 1), km),
    }


if __name__ == "__main__":
    B, T, E, H = 2, 8, 32, 32
    vocab_size = 1000  # small vocab for the synthetic example (module takes it as an arg)

    key = jax.random.PRNGKey(0)
    pkey, ikey = jax.random.split(key)
    params = init_params(pkey, vocab_size, E, H)
    raw_input = jax.random.randint(ikey, (B, T), 0, vocab_size, dtype=jnp.int32)

    out = jax.block_until_ready(lstm_classifier_forward(raw_input, params))
    ref = jax.block_until_ready(reference_forward(raw_input, params))

    assert out.shape == (B, 1), out.shape
    np.testing.assert_allclose(np.asarray(out), np.asarray(ref), rtol=1e-5, atol=1e-5)
    print("KERNEL_OK")
</pallas_src>

<mosaic_0001>
module attributes {stable_mosaic.version = 11 : i64} {
  func.func @_matmul_bias_kernel(%arg0: memref<16x32xf32, #tpu.memory_space<vmem>>, %arg1: memref<32x256xf32, #tpu.memory_space<vmem>>, %arg2: memref<1x256xf32, #tpu.memory_space<vmem>>, %arg3: memref<16x256xf32, #tpu.memory_space<vmem>>) attributes {dimension_semantics = [], scalar_prefetch = 0 : i64, scratch_operands = 0 : i64, tpu.core_type = #tpu.core_type<tc>} {
    %c0 = arith.constant 0 : index
    %c0_0 = arith.constant 0 : index
    %0 = vector.load %arg0[%c0, %c0_0] : memref<16x32xf32, #tpu.memory_space<vmem>>, vector<16x32xf32>
    %c0_1 = arith.constant 0 : index
    %c0_2 = arith.constant 0 : index
    %1 = vector.load %arg1[%c0_1, %c0_2] : memref<32x256xf32, #tpu.memory_space<vmem>>, vector<32x256xf32>
    %cst = arith.constant dense<0.000000e+00> : vector<16x256xf32>
    %2 = tpu.matmul %0, %1, %cst {dimension_numbers = #tpu.dot_dimension_numbers<[1], [0], [0], [1], [0, 0, 1, 1], [], []>} : vector<16x32xf32>, vector<32x256xf32>, vector<16x256xf32> -> vector<16x256xf32>
    %c0_3 = arith.constant 0 : index
    %c0_4 = arith.constant 0 : index
    %3 = vector.load %arg2[%c0_3, %c0_4] : memref<1x256xf32, #tpu.memory_space<vmem>>, vector<1x256xf32>
    %4 = vector.broadcast %3 : vector<1x256xf32> to vector<16x256xf32>
    %5 = arith.addf %2, %4 : vector<16x256xf32>
    %c0_5 = arith.constant 0 : index
    %c0_6 = arith.constant 0 : index
    %6 = vector.load %arg3[%c0_5, %c0_6] : memref<16x256xf32, #tpu.memory_space<vmem>>, vector<16x256xf32>
    tpu.vector_store %arg3[%c0_5, %c0_6], %5 {strides = array<i32>} : memref<16x256xf32, #tpu.memory_space<vmem>>, vector<16x256xf32>,
    return
  }
}

</mosaic_0001>

<bundles_post_ra>
// kernel: tpu_custom_call.1
= control target key start
LH: loop header
LB: loop body
LE: loop exit
PB: predicated region body
PF: predicated region fallthrough
CT: control target
= control target key end

     0   :  { %8 = vsyncpa [#allocation3], 0  ;;  %s321_s0 = inlined_call_operand.hbm [shape: f32[16,32], index: 0, kind: input, shape index: {}]   ;;  %s322_s1 = inlined_call_operand.hbm [shape: f32[32,256], index: 1, kind: input, shape index: {}]   ;;  %s323_s2 = inlined_call_operand.hbm [shape: f32[1,256], index: 2, kind: input, shape index: {}]   ;;  %s324_s3 = inlined_call_operand.hbm [shape: f32[16,256], index: 3, kind: output, shape index: {}]  }
   0x1   :  { %9 = vsyncpa [#allocation6], 0  ;;  %s28_s14 = sshll.u32 %s322_s1, 4  ;;  %s29_s14 = int_to_ptr.hbm [resolvable:$true] %s28_s14 }
   0x2   :  { %10 = vsyncpa [#allocation4], 0  ;;  %s275_s15 = smov [#allocation5]   ;;  %s15_s19 = sshll.u32 %s321_s0, 4  ;;  %s16_s19 = int_to_ptr.hbm [resolvable:$true] %s15_s19 }
   0x3   :  { %s30_s16 = sshll.u32 %s275_s15, 4  ;;  %s276_s20 = smov 256   ;;  %s31_s16 = int_to_ptr.vmem [resolvable:$true] %s30_s16 }
   0x4   :  { %s277_s21 = smov 16   ;;  %s278_s22 = smov [#allocation2]  }
   0x5   :  { %36 = dma.hbm_to_vmem [thread:$0]  %s29_s14, 1024, %s31_s16, [#allocation6], %s276_s20, %s276_s20, %s277_s21  }
   0x6   :  { %s17_s23 = sshll.u32 %s278_s22, 4  ;;  %s279_s1 = smov 128   ;;  %s18_s23 = int_to_ptr.vmem [resolvable:$true] %s17_s23 }
   0x7   :  { %s280_s24 = smov 8   ;;  %s42_s27 = sshll.u32 %s323_s2, 4  ;;  %s43_s27 = int_to_ptr.hbm [resolvable:$true] %s42_s27 }
   0x8   :  { %23 = dma.hbm_to_vmem [thread:$0]  %s16_s19, 256, %s18_s23, [#allocation3], %s279_s1, %s279_s1, %s280_s24  }
   0x9   :  { %s281_s28 = smov [#allocation7]  }
   0xa   :  { %s44_s0 = sshll.u32 %s281_s28, 4  ;;  %s45_s0 = int_to_ptr.vmem [resolvable:$true] %s44_s0 }
   0xb   :  { %47 = dma.hbm_to_vmem [thread:$0]  %s43_s27, 32, %s45_s0, [#allocation6]  }
   0xc   :  { %269 = dma.done.wait [#allocation3], 256  }
   0xd   :  { %270 = vsyncadd [#allocation3], 4294967040 }
   0xe   :  { %271 = dma.done.wait [#allocation6], 1056  }
   0xf   :  { %272 = vsyncadd [#allocation6], 4294966240  ;;  %v68_v0 = vld [vmem:[#allocation5 + $0x30] sm:$0xff]  ;;  %v69_v1 = vld [vmem:[#allocation5 + $0x38] sm:$0xff]  ;;  %vm76_vm0 = vcmask 261120   ;;  %s282_s2 = smov [#allocation8]  }
  0x10   :  { %v66_v2 = vld [vmem:[#allocation5 + $0x20] sm:$0xff]  ;;  %157 = vmatpush.msra.mxu2 %v68_v0  ;;  %161 = vmatpush.msra.mxu3 %v69_v1  ;;  %v67_v3 = vld [vmem:[#allocation5 + $0x28] sm:$0xff]  ;;  %v64_v4 = vld [vmem:[#allocation5 + $0x10] sm:$0xff]  ;;  %s137_s29 = sshll.u32 %s282_s2, 4  ;;  %s139_s5 = sshll.u32 %s324_s3, 4  ;;  %s138_s29 = int_to_ptr.vmem [resolvable:$true] %s137_s29  ;;  %s140_s5 = int_to_ptr.hbm [resolvable:$true] %s139_s5 }
  0x11   :  { %v65_v5 = vld [vmem:[#allocation5 + $0x18] sm:$0xff]  ;;  %95 = vmatpush.msra.mxu0 %v68_v0  ;;  %118 = vmatpush.msra.mxu1 %v69_v1  ;;  %v62_v6 = vld [vmem:[#allocation5] sm:$0xff]  ;;  %v63_v7 = vld [vmem:[#allocation5 + $0x8] sm:$0xff] }
  0x12   :  { %158 = vmatpush.msra.mxu2 %v66_v2  ;;  %162 = vmatpush.msra.mxu3 %v67_v3  ;;  %v61_v8 = vld [vmem:[#allocation2 + $0x8] sm:$0xff]  ;;  %v60_v9 = vld [vmem:[#allocation2] sm:$0xff]  ;;  %v70_v10 = vld [vmem:[#allocation7] sm:$0x3] }
  0x13   :  { %96 = vmatpush.msra.mxu0 %v66_v2  ;;  %119 = vmatpush.msra.mxu1 %v67_v3  ;;  %v72_v11 = vperm.slane %v70_v10, 0  ;;  %v73_v12 = vperm.slane %v70_v10, 1 }
  0x14   :  { %159 = vmatpush.msra.mxu2 %v64_v4  ;;  %163 = vmatpush.msra.mxu3 %v65_v5 }
  0x15   :  { %97 = vmatpush.msra.mxu0 %v64_v4  ;;  %120 = vmatpush.msra.mxu1 %v65_v5 }
  0x16   :  { %160 = vmatpush.msra.mxu2 %v62_v6  ;;  %164 = vmatpush.msra.mxu3 %v63_v7 }
  0x17   :  { %154 = vmatmul.msk.f32.vlgmr.msra.gmra.mxu2 %vm76_vm0, %v61_v8  ;;  %156 = vmatmul.msk.f32.vlgmr.msra.gmra.mxu3 %vm76_vm0, %v61_v8 }
  0x18   :  { %98 = vmatpush.msra.mxu0 %v62_v6  ;;  %121 = vmatpush.msra.mxu1 %v63_v7 }
  0x19   :  { %153 = vmatmul.msk.f32.vlgmr.msra.gmra.mxu0 %vm76_vm0, %v60_v9  ;;  %155 = vmatmul.msk.f32.vlgmr.msra.gmra.mxu1 %vm76_vm0, %v60_v9 }
  0x96   :  { %v100_v13 = vpop.f32.mrf.mxu0  ;;  %v123_v14 = vpop.f32.mrf.mxu1 }
  0x97   :  { %v101_v15 = vadd.f32 %v100_v13, %v72_v11  ;;  %v124_v16 = vadd.f32 %v123_v14, %v73_v12 }
  0x99   :  { %129 = vst [vmem:[#allocation8] sm:$0xff] %v101_v15 }
  0x9a   :  { %v103_v17 = vpop.f32.mrf.mxu2  ;;  %130 = vst [vmem:[#allocation8 + $0x8] sm:$0xff] %v124_v16  ;;  %v126_v18 = vpop.f32.mrf.mxu3 }
  0x9b   :  { %v104_v19 = vadd.f32 %v103_v17, %v72_v11  ;;  %v127_v20 = vadd.f32 %v126_v18, %v73_v12 }
  0x9d   :  { %131 = vst [vmem:[#allocation8 + $0x10] sm:$0xff] %v104_v19 }
  0x9e   :  { %132 = vst [vmem:[#allocation8 + $0x18] sm:$0xff] %v127_v20 }
  0x9f   :  { %145 = dma.vmem_to_hbm [thread:$0]  %s138_s29, 512, %s140_s5, [#allocation4], %s276_s20, %s276_s20, %s277_s21  }
  0xa0   :  { %273 = dma.done.wait [#allocation4], 512  }
  0xa1   :  { %274 = vsyncadd [#allocation4], 4294966784 }
  0xa2   :  { %150 = vsyncpa [#allocation3], 1 }
  0xa3   :  { %151 = vsyncpa [#allocation6], 1 }
  0xa4   :  { %152 = vsyncpa [#allocation4], 1 }

</bundles_post_ra>
